<compile_context>
chip_gen: v5e
topology: v5e:2x2
jax: 0.10.0
libtpu: 0.0.40
codegen_flags: <defaults>
</compile_context>

<pallas_src>
import math

import jax
import jax.numpy as jnp
from jax.experimental import pallas as pl
from jax.experimental.pallas import tpu as pltpu


# ---------------------------------------------------------------------------
# Fused kernel: out[i, :] += adj[i, k] @ (x[k, :] @ W)
# Grid = (row tiles, K tiles); K is the reduction ("arbitrary") axis.
# ---------------------------------------------------------------------------
def _dense_graph_conv_kernel(adj_ref, x_ref, w_ref, out_ref):
    # The output block index is (i, 0): constant across the K axis, so the f32
    # output tile is VMEM-resident for the whole reduction -> accumulate
    # directly into it (no scratch accumulator, no finalize copy).
    @pl.when(pl.program_id(1) == 0)
    def _init():
        out_ref[...] = jnp.zeros_like(out_ref)

    # XW slice for this K tile.  W is VMEM-resident; recomputing XW per row
    # tile costs ~in_ch_pad/tile_m extra MXU work (free: kernel is HBM-bound)
    # and avoids an XW HBM round trip entirely.
    xw = jnp.dot(x_ref[...], w_ref[...], preferred_element_type=jnp.float32)
    out_ref[...] += jnp.dot(
        adj_ref[...], xw.astype(adj_ref.dtype),
        preferred_element_type=jnp.float32)


# ---------------------------------------------------------------------------
# Tiling helpers.
# ---------------------------------------------------------------------------
def _cdiv(a, b):
    return -(-a // b)


def _round_up(v, m):
    return ((v + m - 1) // m) * m


def _pick_tile(n, desired):
    """Return (tile, padded_n): tile is a multiple of 128, <= max(desired,128),
    and divides padded_n (>= n) with minimal zero padding."""
    desired = max(128, (int(desired) // 128) * 128)
    num = _cdiv(n, desired)
    tile = _round_up(_cdiv(n, num), 128)
    return tile, num * tile


def _vmem_estimate(tm, tk, ic_pad, oc_pad, cd_bytes):
    return (2 * tm * tk * cd_bytes          # adj tile, double-buffered
            + 2 * tk * ic_pad * cd_bytes    # x tile, double-buffered
            + 2 * ic_pad * oc_pad * cd_bytes  # resident W
            + 2 * tm * oc_pad * 4           # f32 output tile (accumulator)
            + tk * oc_pad * (4 + cd_bytes))  # in-kernel XW temporary


# ---------------------------------------------------------------------------
# Wrapper.
# ---------------------------------------------------------------------------
def dense_graph_conv(x, weight, adj, *, tile_m=2048, tile_k=1024,
                     compute_dtype=jnp.bfloat16):
    """out = adj @ (x @ weight)   (DenseGraphConv forward).

    compute_dtype: dtype of the streamed MXU operands (adj, x, W).  The default
    bfloat16 halves HBM traffic on the bandwidth-bound adj stream while keeping
    a float32 accumulator; it is exact for {0,1} adjacency but slightly lossy
    for weighted/normalized adjacency.  Pass jnp.float32 for exact f32 math.
    """
    n, in_ch = x.shape
    in_ch_w, out_ch = weight.shape
    assert in_ch_w == in_ch
    assert adj.shape == (n, n)

    out_dtype = x.dtype
    cd = jnp.dtype(compute_dtype if compute_dtype is not None else x.dtype)
    cd_bytes = cd.itemsize

    # Lane-dense channel padding (multiples of 128).
    ic_pad = _round_up(in_ch, 128)
    oc_pad = _round_up(out_ch, 128)
    # NOTE: if oc_pad > ic_pad one could reorder to (adj @ x) @ W to shrink the
    # streamed width; for typical GCN sizes both pad to 128 so it is a wash.

    # Tile selection + zero padding (exact: padded adj columns hit zero x rows,
    # padded x columns hit zero W rows, padded output rows/cols are sliced).
    tm, n_pad_m = _pick_tile(n, tile_m)
    tk, n_pad_k = _pick_tile(n, tile_k)
    # Give a v7x megacore >= 2 row tiles on the parallel axis, but only when it
    # does not increase padding (so it is free on single-TC v5e/v6e too).
    if n_pad_m == tm and tm >= 256:
        tm2, n_pad_m2 = _pick_tile(n, tm // 2)
        if n_pad_m2 == n_pad_m:
            tm, n_pad_m = tm2, n_pad_m2

    # Generation-aware VMEM budget (v7x: 64 MiB/TC vs 128 MiB on v5e/v6e).
    try:
        vmem_cap = int(getattr(pltpu.get_tpu_info(), "vmem_capacity_bytes",
                               64 * 1024 * 1024))
    except Exception:  # pragma: no cover - defensive fallback
        vmem_cap = 64 * 1024 * 1024
    budget = (vmem_cap * 3) // 4
    while _vmem_estimate(tm, tk, ic_pad, oc_pad, cd_bytes) > budget:
        if tk > 128 and tk >= tm:
            tk, n_pad_k = _pick_tile(n, tk // 2)
        elif tm > 128:
            tm, n_pad_m = _pick_tile(n, tm // 2)
        else:
            break
    vmem_limit = int(min(
        max(2 * _vmem_estimate(tm, tk, ic_pad, oc_pad, cd_bytes),
            32 * 1024 * 1024),
        budget))

    adj_p = adj
    if (n_pad_m, n_pad_k) != (n, n):
        adj_p = jnp.pad(adj, ((0, n_pad_m - n), (0, n_pad_k - n)))
    x_p = x
    if (n_pad_k, ic_pad) != (n, in_ch):
        x_p = jnp.pad(x, ((0, n_pad_k - n), (0, ic_pad - in_ch)))
    w_p = weight
    if (ic_pad, oc_pad) != (in_ch, out_ch):
        w_p = jnp.pad(weight, ((0, ic_pad - in_ch), (0, oc_pad - out_ch)))

    adj_p = adj_p.astype(cd)
    x_p = x_p.astype(cd)
    w_p = w_p.astype(cd)

    grid = (n_pad_m // tm, n_pad_k // tk)

    out_pad = pl.pallas_call(
        _dense_graph_conv_kernel,
        out_shape=jax.ShapeDtypeStruct((n_pad_m, oc_pad), jnp.float32),
        grid_spec=pltpu.PrefetchScalarGridSpec(
            num_scalar_prefetch=0,
            grid=grid,
            in_specs=[
                pl.BlockSpec((tm, tk), lambda i, k: (i, k)),          # adj
                pl.BlockSpec((tk, ic_pad), lambda i, k: (k, 0)),      # x
                pl.BlockSpec((ic_pad, oc_pad), lambda i, k: (0, 0)),  # W (resident)
            ],
            out_specs=pl.BlockSpec((tm, oc_pad), lambda i, k: (i, 0)),
        ),
        compiler_params=pltpu.CompilerParams(
            dimension_semantics=("parallel", "arbitrary"),
            vmem_limit_bytes=vmem_limit,
        ),
    )(adj_p, x_p, w_p)

    out = out_pad
    if (n_pad_m, oc_pad) != (n, out_ch):
        out = out[:n, :out_ch]
    return out.astype(out_dtype)


def init_glorot(key, in_channels, out_channels):
    # Glorot / Xavier uniform: U(-limit, limit), limit = sqrt(6/(fan_in+fan_out))
    limit = math.sqrt(6.0 / (in_channels + out_channels))
    return jax.random.uniform(
        key, (in_channels, out_channels), dtype=jnp.float32,
        minval=-limit, maxval=limit,
    )


def reference(x, weight, adj):
    return adj @ (x @ weight)


if __name__ == "__main__":
    key = jax.random.PRNGKey(0)
    k_x, k_w, k_a = jax.random.split(key, 3)

    N = 256           # number of graph nodes
    IN_CH = 32        # in_channels
    OUT_CH = 16       # out_channels

    x = jax.random.normal(k_x, (N, IN_CH), dtype=jnp.float32)
    weight = init_glorot(k_w, IN_CH, OUT_CH)
    adj = jax.random.uniform(k_a, (N, N), dtype=jnp.float32)
    ref = reference(x, weight, adj)

    # 1) Exact f32 path with small tiles so the (row x K) accumulation grid is
    #    exercised even at this toy size (production defaults: 2048 x 1024).
    out_f32 = dense_graph_conv(x, weight, adj, tile_m=128, tile_k=128,
                               compute_dtype=jnp.float32)
    out_f32 = jax.block_until_ready(out_f32)
    assert out_f32.shape == (N, OUT_CH)
    assert jnp.allclose(out_f32, ref, atol=1e-4, rtol=1e-4), "f32 mismatch"

    # 2) Default bandwidth-optimized path (bf16 streamed operands, f32
    #    accumulation) with default tiling / megacore row split.
    out_bf16 = dense_graph_conv(x, weight, adj)
    out_bf16 = jax.block_until_ready(out_bf16)
    assert out_bf16.shape == (N, OUT_CH)
    assert jnp.allclose(out_bf16, ref, atol=5e-1, rtol=5e-2), "bf16 mismatch"

    # 3) Non-128-aligned N exercises the zero-padding path (exact in f32).
    N2 = 200
    x2 = jax.random.normal(k_x, (N2, IN_CH), dtype=jnp.float32)
    adj2 = jax.random.uniform(k_a, (N2, N2), dtype=jnp.float32)
    out2 = dense_graph_conv(x2, weight, adj2, compute_dtype=jnp.float32)
    out2 = jax.block_until_ready(out2)
    assert out2.shape == (N2, OUT_CH)
    assert jnp.allclose(out2, reference(x2, weight, adj2),
                        atol=1e-4, rtol=1e-4), "padded-N mismatch"

    print("KERNEL_OK")
</pallas_src>

<mosaic_0001>
module attributes {stable_mosaic.version = 11 : i64} {
  func.func @_dense_graph_conv_kernel(%arg0: i32, %arg1: i32, %arg2: memref<128x128xf32, #tpu.memory_space<vmem>>, %arg3: memref<128x128xf32, #tpu.memory_space<vmem>>, %arg4: memref<128x128xf32, #tpu.memory_space<vmem>>, %arg5: memref<128x128xf32, #tpu.memory_space<vmem>>) attributes {dimension_semantics = [#tpu.dimension_semantics<parallel>, #tpu.dimension_semantics<arbitrary>], iteration_bounds = array<i64: 2, 2>, scalar_prefetch = 0 : i64, scratch_operands = 0 : i64, tpu.core_type = #tpu.core_type<tc>, window_params = [{transform_indices = @transform_0, window_bounds = array<i64: 128, 128>}, {transform_indices = @transform_1, window_bounds = array<i64: 128, 128>}, {pipeline_mode = #tpu.pipeline_mode<synchronous>, transform_indices = @transform_2, window_bounds = array<i64: 128, 128>}, {transform_indices = @transform_3, window_bounds = array<i64: 128, 128>}]} {
    %c0_i32 = arith.constant 0 : i32
    %0 = arith.cmpi eq, %arg1, %c0_i32 : i32
    %1 = arith.extui %0 : i1 to i32
    %c0_i32_0 = arith.constant 0 : i32
    %2 = arith.cmpi ne, %1, %c0_i32_0 : i32
    scf.if %2 {
      %cst_11 = arith.constant 0.000000e+00 : f32
      %11 = vector.broadcast %cst_11 : f32 to vector<128x128xf32>
      %c0_12 = arith.constant 0 : index
      %c0_13 = arith.constant 0 : index
      %12 = vector.load %arg5[%c0_12, %c0_13] : memref<128x128xf32, #tpu.memory_space<vmem>>, vector<128x128xf32>
      tpu.vector_store %arg5[%c0_12, %c0_13], %11 {strides = array<i32>} : memref<128x128xf32, #tpu.memory_space<vmem>>, vector<128x128xf32>,
    } else {
    }
    %c0 = arith.constant 0 : index
    %c0_1 = arith.constant 0 : index
    %3 = vector.load %arg3[%c0, %c0_1] : memref<128x128xf32, #tpu.memory_space<vmem>>, vector<128x128xf32>
    %c0_2 = arith.constant 0 : index
    %c0_3 = arith.constant 0 : index
    %4 = vector.load %arg4[%c0_2, %c0_3] : memref<128x128xf32, #tpu.memory_space<vmem>>, vector<128x128xf32>
    %cst = arith.constant dense<0.000000e+00> : vector<128x128xf32>
    %5 = tpu.matmul %3, %4, %cst {dimension_numbers = #tpu.dot_dimension_numbers<[1], [0], [0], [1], [0, 0, 1, 1], [], []>} : vector<128x128xf32>, vector<128x128xf32>, vector<128x128xf32> -> vector<128x128xf32>
    %c0_4 = arith.constant 0 : index
    %c0_5 = arith.constant 0 : index
    %6 = vector.load %arg5[%c0_4, %c0_5] : memref<128x128xf32, #tpu.memory_space<vmem>>, vector<128x128xf32>
    %c0_6 = arith.constant 0 : index
    %c0_7 = arith.constant 0 : index
    %7 = vector.load %arg2[%c0_6, %c0_7] : memref<128x128xf32, #tpu.memory_space<vmem>>, vector<128x128xf32>
    %cst_8 = arith.constant dense<0.000000e+00> : vector<128x128xf32>
    %8 = tpu.matmul %7, %5, %cst_8 {dimension_numbers = #tpu.dot_dimension_numbers<[1], [0], [0], [1], [0, 0, 1, 1], [], []>} : vector<128x128xf32>, vector<128x128xf32>, vector<128x128xf32> -> vector<128x128xf32>
    %9 = arith.addf %6, %8 : vector<128x128xf32>
    %c0_9 = arith.constant 0 : index
    %c0_10 = arith.constant 0 : index
    %10 = vector.load %arg5[%c0_9, %c0_10] : memref<128x128xf32, #tpu.memory_space<vmem>>, vector<128x128xf32>
    tpu.vector_store %arg5[%c0_9, %c0_10], %9 {strides = array<i32>} : memref<128x128xf32, #tpu.memory_space<vmem>>, vector<128x128xf32>,
    return
  }
  func.func @transform_0(%arg0: i32, %arg1: i32) -> (i32, i32) {
    %c0_i32 = arith.constant 0 : i32
    return %arg0, %arg1 : i32, i32
  }
  func.func @transform_1(%arg0: i32, %arg1: i32) -> (i32, i32) {
    %c0_i32 = arith.constant 0 : i32
    %c0_i32_0 = arith.constant 0 : i32
    return %arg1, %c0_i32 : i32, i32
  }
  func.func @transform_2(%arg0: i32, %arg1: i32) -> (i32, i32) {
    %c0_i32 = arith.constant 0 : i32
    %c0_i32_0 = arith.constant 0 : i32
    %c0_i32_1 = arith.constant 0 : i32
    return %c0_i32, %c0_i32_0 : i32, i32
  }
  func.func @transform_3(%arg0: i32, %arg1: i32) -> (i32, i32) {
    %c0_i32 = arith.constant 0 : i32
    %c0_i32_0 = arith.constant 0 : i32
    return %arg0, %c0_i32 : i32, i32
  }
}

</mosaic_0001>

<bundles_post_ra>
// kernel: tpu_custom_call.1
= control target key start
LH: loop header
LB: loop body
LE: loop exit
PB: predicated region body
PF: predicated region fallthrough
CT: control target
= control target key end

     0   :  { %s1483_s0 = inlined_call_operand.hbm [shape: f32[256,256], index: 0, kind: input, shape index: {}]   ;;  %s1484_s1 = inlined_call_operand.hbm [shape: f32[256,128], index: 1, kind: input, shape index: {}]   ;;  %s1485_s2 = inlined_call_operand.hbm [shape: f32[128,128], index: 2, kind: input, shape index: {}]   ;;  %s1486_s3 = inlined_call_operand.hbm [shape: f32[256,128], index: 3, kind: output, shape index: {}]  }
   0x1   :  { %1501 = sst [smem:[#allocation24_spill]] %s1483_s0 }
   0x2   :  { %1502 = sst [smem:[#allocation25_spill]] %s1485_s2 }
   0x3   :  { %1503 = sst [smem:[#allocation26_spill]] %s1486_s3 }
   0x4   :  { %8 = vsyncpa [#allocation3], 0 }
   0x5   :  { %10 = vsyncpa [#allocation3 + $0x1], 0 }
   0x6   :  { %11 = vsyncpa [#allocation6], 0 }
   0x7   :  { %13 = vsyncpa [#allocation6 + $0x1], 0 }
   0x8   :  { %14 = vsyncpa [#allocation4], 0 }
   0x9   :  { %16 = vsyncpa [#allocation4 + $0x1], 0  ;;  %s1127_s12 = smov 0   ;;  %s1129_s13 = smov 0  }
   0xa   :  { %s1131_s14 = smov 0   ;;  %s1133_s15 = smov 0  }
   0xb   :  { %s1135_s16 = smov 0   ;;  %s1137_s17 = smov 0  }
   0xc   :  { %s1139_s18 = smov 0   ;;  %s1141_s19 = smov 0  }
   0xd   :  { %s1143_s20 = smov 0   ;;  %s1145_s21 = smov 0  }
   0xe   :  { %s1147_s22 = smov 0   ;;  %s1149_s23 = smov 0  }
   0xf   :  { %s1151_s24 = smov 0   ;;  %s1153_s25 = smov 0  }
  0x10 LB: > { %1504 = sst [smem:[#allocation13_spill]] %s1046_s12  ;;  %s1194_s26 = sadd.s32 4294967295, %s1098_s25   ;;  %s1098_s25 = sphi %s1153_s25, %s22_s25   ;;  %s1094_s24 = sphi %s1151_s24, %s1549_s24   ;;  %s1090_s23 = sphi %s1149_s23, %s1548_s23   ;;  %s1086_s22 = sphi %s1147_s22, %s1547_s22   ;;  %s1082_s21 = sphi %s1145_s21, %s1546_s21   ;;  %s1078_s20 = sphi %s1143_s20, %s1534_s20   ;;  %s1074_s19 = sphi %s1141_s19, %s1545_s19   ;;  %s1070_s18 = sphi %s1139_s18, %s1544_s18   ;;  %s1066_s17 = sphi %s1137_s17, %s1543_s17   ;;  %s1062_s16 = sphi %s1135_s16, %s1542_s16   ;;  %s1058_s15 = sphi %s1133_s15, %s1541_s15   ;;  %s1054_s14 = sphi %s1131_s14, %s1532_s14   ;;  %s1050_s13 = sphi %s1129_s13, %s1540_s13   ;;  %s1046_s12 = sphi %s1127_s12, %s1539_s12  }
  0x11   : > { %1505 = sst [smem:[#allocation14_spill]] %s1054_s14  ;;  %s649_s27 = sadd.s32 4294967294, %s1098_s25  }
  0x12   : > { %1506 = sst [smem:[#allocation15_spill]] %s1078_s20  ;;  %p56_p0 = scmp.ne.s32.totalorder %s1074_s19, %s1070_s18 }
  0x13   : > { %1507 = sst [smem:[#allocation16_spill]] %s1086_s22  ;;  %p57_p1 = scmp.eq.s32.totalorder %s1194_s26, 0 }
  0x14   : > { %1508 = sst [smem:[#allocation17_spill]] %s1094_s24  ;;  %p82_p2 = scmp.ne.s32.totalorder %s1062_s16, %s1058_s15 }
  0x15   : > { %p126_p3 = scmp.ne.s32.totalorder %s1054_s14, %s1050_s13  ;;  %p1204_p4 = por %p57_p1, %p56_p0 }
  0x16   : > { %p127_p5 = scmp.eq.s32.totalorder %s1194_s26, 3  ;;  %p1211_p6 = por %p82_p2, %p57_p1 }
  0x17   : > { %p132_p7 = scmp.ne.s32.totalorder %s1050_s13, %s1046_s12  ;;  %p133_p9 = scmp.eq.s32.totalorder %s649_s27, 3 }
  0x18   : > { %p1217_p8 = por %p127_p5, %p126_p3  ;;  %p650_p10 = scmp.ge.s32.totalorder %s1098_s25, 1 }
  0x19   : > { %p140_p11 = scmp.lt.s32.totalorder %s1098_s25, 5  ;;  %p1223_p12 = por %p133_p9, %p132_p7 }
  0x1a   : > { %s1511_s30 = scalar_select %p1217_p8, 1, 0 }
  0x1b   : > { %s1513_s4 = scalar_select %p1223_p12, 1, 0 }
  0x1c   : > { %1512 = sst [smem:[#allocation18_spill]] %s1511_s30  ;;  %p1227_p13 = pnand %p650_p10, %p140_p11 }
  0x1d   : > { %1514 = sst [smem:[#allocation19_spill]] %s1513_s4  ;;  %s1100_s9 = smov [#allocation7]  }
  0x1e   : > { %s1516_s2 = sld [smem:[#allocation25_spill]]  ;;  %p716_p0 = pneg %p1227_p13 }
  0x1f   : > { %s153_s10 = sshll.u32 %s1100_s9, 4  ;;  %s1487_s11 = smov 128   ;;  %s154_s10 = int_to_ptr.vmem [resolvable:$true] %s153_s10 }
  0x20   : > { %p717_p2 = pnand %p716_p0, %p57_p1  ;;  %s1489_s15 = smov 8  }
  0x21   : > { %s31_s18 = sadd.s32 1, %s1090_s23  ;;  %s34_s27 = sadd.s32 1, %s1094_s24 }
  0x22   : > { %p32_p3 = scmp.ge.s32.totalorder %s31_s18, 2  ;;  %s43_s6 = sadd.s32 1, %s1078_s20 }
  0x23   : > { %p50_p5 = scmp.ne.s32.totalorder %s1078_s20, %s1074_s19  ;;  %p51_p7 = scmp.eq.s32.totalorder %s1098_s25, 0 }
  0x24   : > { %s151_s8 = sshll.u32 %s1516_s2, 4  ;;  %s1551_s18 = smov (%p32_p3, %s31_s18), 0  ;;  %s152_s8 = int_to_ptr.hbm [resolvable:$true] %s151_s8 }
  0x25   : > { %719 = dma.hbm_to_vmem [thread:$0]  (!%p717_p2), %s152_s8, 2048, %s154_s10, [#allocation6], %s1487_s11, %s1487_s11, %s1489_s15  }
  0x26   : > { %1517 = sst [smem:[#allocation20_spill]] %s1551_s18  ;;  %s1553_s27 = smov (!%p32_p3, %s34_s27), %s1094_s24 }
  0x27   : > { %s1252_s7 = ssub.s32 %s1090_s23, %s1551_s18  ;;  %p1256_p9 = por %p51_p7, %p50_p5 }
  0x28   : > { %p36_p10 = scmp.ge.s32.totalorder %s1553_s27, 2  ;;  %p67_p11 = scmp.eq.s32.totalorder %s1252_s7, 0 }
  0x29   : > { %s116_s9 = sadd.s32 1, %s1054_s14  ;;  %p732_p0 = scmp.lt.s32.totalorder %s1098_s25, 4 }
  0x2a   : > { %s1555_s27 = smov (%p36_p10, %s1553_s27), 0  ;;  %s167_s10 = sand.u32 1, %s1078_s20  }
  0x2b   : > { %1519 = sst [smem:[#allocation21_spill]] %s1555_s27  ;;  %s671_s11 = sshll.u32 %s1094_s24, 5 }
  0x2c   : > { %s38_s15 = ssub.s32 %s1094_s24, %s1555_s27  ;;  %s653_s18 = sshll.u32 %s167_s10, 7 }
  0x2d   : > { %s40_s2 = sor.u32 %s1252_s7, %s38_s15  ;;  %p114_p2 = scmp.eq.s32.totalorder %s38_s15, 0 }
  0x2e   : > { %p41_p3 = scmp.eq.s32.totalorder %s40_s2, 0  ;;  %s176_s30 = sadd.s32 %s1090_s23, %s671_s11 }
  0x2f   : > { %s1271_s4 = scalar_select %p114_p2, %s1054_s14, %s116_s9  }
  0x30   : > { %s1274_s12 = scalar_select %p41_p3, %s1078_s20, %s43_s6  }
  0x31   : > { %1520 = sst [smem:[#allocation22_spill]] %s1271_s4  ;;  %s656_s3 = sshll.u32 %s176_s30, 3 }
  0x32   : > { %1521 = sst [smem:[#allocation23_spill]] %s1274_s12  ;;  %s171_s22 = scalar_lea.vmem [#allocation2], %s653_s18 }
  0x33   : > { %s181_s27 = sshll.u32 %s171_s22, 4  ;;  %s1522_s0 = sld [smem:[#allocation24_spill]]  ;;  %s182_s27 = int_to_ptr.vmem [resolvable:$true] %s181_s27 }
  0x34   : > { %p721_p5 = pnand %p732_p0, %p1256_p9  ;;  %s168_s6 = scalar_lea.sflag [#allocation3], %s167_s10 }
  0x35   : > { %s1103_s12 = smov 256   ;;  %s1523_s20 = smov 8  }
  0x36   : > { %s1524_s11 = smov 128   ;;  %s191_s30 = sand.u32 1, %s1098_s25  }
  0x37   : > { %s69_s18 = sadd.s32 1, %s1066_s17  ;;  %p76_p10 = scmp.ne.s32.totalorder %s1066_s17, %s1062_s16 }
  0x38   : > { %s1293_s22 = scalar_select %p67_p11, %s1066_s17, %s69_s18  }
  0x39   : > { %s178_s24 = scalar_lea.hbm %s1522_s0, %s656_s3  ;;  %p78_p2 = por %p76_p10, %p51_p7 }
  0x3a   : > { %s179_s9 = sshll.u32 %s178_s24, 4  ;;  %s193_s3 = sand.u32 1, %s1066_s17   ;;  %s180_s9 = int_to_ptr.hbm [resolvable:$true] %s179_s9 }
  0x3b   : > { %723 = dma.hbm_to_vmem [thread:$0]  (!%p721_p5), %s180_s9, 2048, %s182_s27, %s168_s6, %s1103_s12, %s1524_s11, %s1523_s20  }
  0x3c   : > { %s672_s24 = sshll.u32 %s1090_s23, 7  ;;  %s657_s8 = sshll.u32 %s193_s3, 7 }
  0x3d   : > { %s200_s10 = scalar_lea.hbm %s1484_s1, %s672_s24  ;;  %s195_s4 = scalar_lea.vmem [#allocation5], %s657_s8 }
  0x3e   : > { %s201_s0 = sshll.u32 %s200_s10, 4  ;;  %s203_s14 = sshll.u32 %s195_s4, 4  ;;  %s202_s0 = int_to_ptr.hbm [resolvable:$true] %s201_s0  ;;  %s204_s14 = int_to_ptr.vmem [resolvable:$true] %s203_s14 }
  0x3f   : > { %p724_p9 = pnand %p732_p0, %p78_p2  ;;  %s192_s12 = scalar_lea.sflag [#allocation6], %s191_s30 }
  0x40   : > { %215 = sbr.rel (%p1227_p13) target bundleno = 545 (0x221), region = 32  ;;  %s217_s27 = sand.u32 (!%p1227_p13), 1, %s1074_s19  }
  0x41   : > { %726 = dma.hbm_to_vmem [thread:$0]  (!%p724_p9), %s202_s0, 2048, %s204_s14, %s192_s12, %s1524_s11, %s1524_s11, %s1523_s20  }
  0x42   : > { %s661_s7 = sshll.u32 (!%p1227_p13), %s217_s27, 7  ;;  %s218_s9 = scalar_lea.sflag (!%p1227_p13), [#allocation3], %s217_s27 }
  0x43   : > { %s1310_s6 = scalar_lea.vmem (!%p1227_p13), [#allocation2], %s661_s7 }
  0x45   : > { %1029 = dma.done.wait (%p1204_p4), %s218_s9, 2048  }
  0x46   : > { %1031 = vsyncadd (%p1204_p4), %s218_s9, 4294965248  ;;  %s227_s4 = sand.u32 1, %s1194_s26   ;;  %s229_s0 = sand.u32 1, %s1062_s16  }
  0x47   : > { %s662_s14 = sshll.u32 %s229_s0, 7  ;;  %s228_s20 = scalar_lea.sflag [#allocation6], %s227_s4 }
  0x48   : > { %s1318_s5 = scalar_lea.vmem [#allocation5], %s662_s14 }
  0x49   : > { %1033 = dma.done.wait (%p1211_p6), %s228_s20, 2048  }
  0x4a   : > { %1035 = vsyncadd (%p1211_p6), %s228_s20, 4294965248 }
  0x4b   : > { %1037 = dma.done.wait (%p57_p1), [#allocation6], 2048  }
  0x4c   : > { %1039 = vsyncadd (%p57_p1), [#allocation6], 4294965248  ;;  %s262_s28 = sand.u32 1, %s1050_s13   ;;  %p665_p4 = scmp.ne.s32.totalorder %s1082_s21, 0 }
  0x4d   : > { %s664_s11 = sshll.u32 %s262_s28, 7 }
  0x4e   : > { %s1331_s30 = scalar_lea.vmem [#allocation8], %s664_s11  ;;  %271 = sbr.rel (%p665_p4) target bundleno = 100 (0x64), region = 48 }
  0x53   : > { %v1104_v0 = vmov 0.0  }
  0x54   : > { %272 = vst [vmem:[%s1331_s30] sm:$0xff] %v1104_v0 }
  0x55   : > { %273 = vst [vmem:[%s1331_s30 + $0x8] sm:$0xff] %v1104_v0 }
  0x56   : > { %274 = vst [vmem:[%s1331_s30 + $0x10] sm:$0xff] %v1104_v0 }
  0x57   : > { %275 = vst [vmem:[%s1331_s30 + $0x18] sm:$0xff] %v1104_v0 }
  0x58   : > { %276 = vst [vmem:[%s1331_s30 + $0x20] sm:$0xff] %v1104_v0 }
  0x59   : > { %277 = vst [vmem:[%s1331_s30 + $0x28] sm:$0xff] %v1104_v0 }
  0x5a   : > { %278 = vst [vmem:[%s1331_s30 + $0x30] sm:$0xff] %v1104_v0 }
  0x5b   : > { %279 = vst [vmem:[%s1331_s30 + $0x38] sm:$0xff] %v1104_v0 }
  0x5c   : > { %280 = vst [vmem:[%s1331_s30 + $0x40] sm:$0xff] %v1104_v0 }
  0x5d   : > { %281 = vst [vmem:[%s1331_s30 + $0x48] sm:$0xff] %v1104_v0 }
  0x5e   : > { %282 = vst [vmem:[%s1331_s30 + $0x50] sm:$0xff] %v1104_v0 }
  0x5f   : > { %283 = vst [vmem:[%s1331_s30 + $0x58] sm:$0xff] %v1104_v0 }
  0x60   : > { %284 = vst [vmem:[%s1331_s30 + $0x60] sm:$0xff] %v1104_v0 }
  0x61   : > { %285 = vst [vmem:[%s1331_s30 + $0x68] sm:$0xff] %v1104_v0 }
  0x62   : > { %286 = vst [vmem:[%s1331_s30 + $0x70] sm:$0xff] %v1104_v0 }
  0x63   : > { %287 = vst [vmem:[%s1331_s30 + $0x78] sm:$0xff] %v1104_v0 }
  0x64 PF: > { %v319_v1 = vld [vmem:[#allocation7 + $0x78] sm:$0xff]  ;;  %v318_v2 = vld [vmem:[#allocation7 + $0x70] sm:$0xff]  ;;  %v317_v3 = vld [vmem:[#allocation7 + $0x68] sm:$0xff]  ;;  %s1525_s21 = sld [smem:[#allocation16_spill]]  ;;  %s527_s15 = sshll.u32 %s1331_s30, 4  ;;  %s528_s15 = int_to_ptr.vmem [resolvable:$true] %s527_s15 }
  0x65   : > { %674 = vmatpush.msra.mxu2 %v319_v1  ;;  %320 = vmatpush.msra.mxu0 %v319_v1  ;;  %v316_v4 = vld [vmem:[#allocation7 + $0x60] sm:$0xff]  ;;  %v315_v5 = vld [vmem:[#allocation7 + $0x58] sm:$0xff]  ;;  %v314_v6 = vld [vmem:[#allocation7 + $0x50] sm:$0xff]  ;;  %s1526_s3 = sld [smem:[#allocation26_spill]]  ;;  %s515_s10 = scalar_lea.sflag [#allocation4], %s262_s28 }
  0x66   : > { %v313_v7 = vld [vmem:[#allocation7 + $0x48] sm:$0xff]  ;;  %v312_v8 = vld [vmem:[#allocation7 + $0x40] sm:$0xff]  ;;  %v311_v9 = vld [vmem:[#allocation7 + $0x38] sm:$0xff] }
  0x67   : > { %675 = vmatpush.msra.mxu2 %v318_v2  ;;  %321 = vmatpush.msra.mxu0 %v318_v2  ;;  %v310_v10 = vld [vmem:[#allocation7 + $0x30] sm:$0xff]  ;;  %v309_v11 = vld [vmem:[#allocation7 + $0x28] sm:$0xff]  ;;  %v308_v12 = vld [vmem:[#allocation7 + $0x20] sm:$0xff] }
  0x68   : > { %v307_v13 = vld [vmem:[#allocation7 + $0x18] sm:$0xff]  ;;  %v306_v14 = vld [vmem:[#allocation7 + $0x10] sm:$0xff]  ;;  %v305_v15 = vld [vmem:[#allocation7 + $0x8] sm:$0xff] }
  0x69   : > { %676 = vmatpush.msra.mxu2 %v317_v3  ;;  %322 = vmatpush.msra.mxu0 %v317_v3  ;;  %v304_v16 = vld [vmem:[#allocation7] sm:$0xff]  ;;  %v297_v19 = vld [vmem:[%s1318_s5 + $0x48] sm:$0xff]  ;;  %v298_v21 = vld [vmem:[%s1318_s5 + $0x50] sm:$0xff] }
  0x6a   : > { %v296_v17 = vld [vmem:[%s1318_s5 + $0x40] sm:$0xff]  ;;  %v289_v20 = vld [vmem:[%s1318_s5 + $0x8] sm:$0xff]  ;;  %v290_v22 = vld [vmem:[%s1318_s5 + $0x10] sm:$0xff]  ;;  %s673_s26 = sshll.u32 %s1525_s21, 7 }
  0x6b   : > { %677 = vmatpush.msra.mxu2 %v316_v4  ;;  %323 = vmatpush.msra.mxu0 %v316_v4  ;;  %v288_v18 = vld [vmem:[%s1318_s5] sm:$0xff]  ;;  %v299_v23 = vld [vmem:[%s1318_s5 + $0x58] sm:$0xff]  ;;  %v301_v27 = vld [vmem:[%s1318_s5 + $0x68] sm:$0xff]  ;;  %s526_s24 = scalar_lea.hbm %s1526_s3, %s673_s26 }
  0x6c   : > { %v291_v24 = vld [vmem:[%s1318_s5 + $0x18] sm:$0xff]  ;;  %v300_v25 = vld [vmem:[%s1318_s5 + $0x60] sm:$0xff]  ;;  %v293_v28 = vld [vmem:[%s1318_s5 + $0x28] sm:$0xff]  ;;  %s529_s2 = sshll.u32 %s526_s24, 4  ;;  %s530_s2 = int_to_ptr.hbm [resolvable:$true] %s529_s2 }
  0x6d   : > { %678 = vmatpush.msra.mxu2 %v315_v5  ;;  %324 = vmatpush.msra.mxu0 %v315_v5  ;;  %v292_v26 = vld [vmem:[%s1318_s5 + $0x20] sm:$0xff]  ;;  %v302_v29 = vld [vmem:[%s1318_s5 + $0x70] sm:$0xff]  ;;  %v303_v31 = vld [vmem:[%s1318_s5 + $0x78] sm:$0xff]  ;;  %s958_s12 = sshra.s32 %s530_s2, 4  ;;  %s959_s12 = int_to_ptr.hbm [resolvable:$true] %s958_s12 }
  0x6e   : > { %v294_v30 = vld [vmem:[%s1318_s5 + $0x30] sm:$0xff]  ;;  %v295_v32 = vld [vmem:[%s1318_s5 + $0x38] sm:$0xff]  ;;  %v409_v49 = vld [vmem:[%s1310_s6 + $0x40] sm:$0xff]  ;;  %s960_s27 = scalar_lea.hbm %s959_s12, 128  ;;  %p965_p7 = scmp.lt.s32.totalorder %s959_s12, %s1526_s3 }
  0x6f   : > { %679 = vmatpush.msra.mxu2 %v314_v6  ;;  %325 = vmatpush.msra.mxu0 %v314_v6  ;;  %v401_v50 = vld [vmem:[%s1310_s6] sm:$0xff]  ;;  %v410_v51 = vld [vmem:[%s1310_s6 + $0x48] sm:$0xff]  ;;  %v411_v53 = vld [vmem:[%s1310_s6 + $0x50] sm:$0xff]  ;;  %p961_p1 = scmp.ne.s32.totalorder %s959_s12, %s960_s27 }
  0x70   : > { %v402_v52 = vld [vmem:[%s1310_s6 + $0x8] sm:$0xff]  ;;  %v403_v54 = vld [vmem:[%s1310_s6 + $0x10] sm:$0xff]  ;;  %v412_v55 = vld [vmem:[%s1310_s6 + $0x58] sm:$0xff] }
  0x71   : > { %680 = vmatpush.msra.mxu2 %v313_v7  ;;  %326 = vmatpush.msra.mxu0 %v313_v7  ;;  %v404_v56 = vld [vmem:[%s1310_s6 + $0x18] sm:$0xff]  ;;  %v413_v57 = vld [vmem:[%s1310_s6 + $0x60] sm:$0xff]  ;;  %v414_v59 = vld [vmem:[%s1310_s6 + $0x68] sm:$0xff]  ;;  %p962_p6 = pnand %p961_p1, %p1217_p8 }
  0x72   : > { %v405_v58 = vld [vmem:[%s1310_s6 + $0x20] sm:$0xff]  ;;  %v406_v60 = vld [vmem:[%s1310_s6 + $0x28] sm:$0xff]  ;;  %v415_v61 = vld [vmem:[%s1310_s6 + $0x70] sm:$0xff] }
  0x73   : > { %681 = vmatpush.msra.mxu2 %v312_v8  ;;  %327 = vmatpush.msra.mxu0 %v312_v8  ;;  %v407_v62 = vld [vmem:[%s1310_s6 + $0x30] sm:$0xff]  ;;  %v416_v63 = vld [vmem:[%s1310_s6 + $0x78] sm:$0xff]  ;;  %v385_v1 = vld [vmem:[%s1331_s30] sm:$0xff]  ;;  %p963_p13 = pneg %p962_p6 }
  0x74   : > { %v408_v0 = vld [vmem:[%s1310_s6 + $0x38] sm:$0xff]  ;;  %v393_v4 = vld [vmem:[%s1331_s30 + $0x40] sm:$0xff]  ;;  %v386_v6 = vld [vmem:[%s1331_s30 + $0x8] sm:$0xff]  ;;  %s964_s6 = scalar_lea.hbm %s1526_s3, 256 }
  0x75   : > { %682 = vmatpush.msra.mxu2 %v311_v9  ;;  %328 = vmatpush.msra.mxu0 %v311_v9  ;;  %p966_p11 = scmp.lt.s32.totalorder %s964_s6, %s960_s27 }
  0x77   : > { %683 = vmatpush.msra.mxu2 %v310_v10  ;;  %329 = vmatpush.msra.mxu0 %v310_v10  ;;  %v394_v10 = vld [vmem:[%s1331_s30 + $0x48] sm:$0xff]  ;;  %p967_p0 = por %p966_p11, %p965_p7 }
  0x79   : > { %684 = vmatpush.msra.mxu2 %v309_v11  ;;  %330 = vmatpush.msra.mxu0 %v309_v11  ;;  %p968_p3 = pnand %p967_p0, %p963_p13 }
  0x7b   : > { %685 = vmatpush.msra.mxu2 %v308_v12  ;;  %331 = vmatpush.msra.mxu0 %v308_v12  ;;  %v387_v12 = vld [vmem:[%s1331_s30 + $0x10] sm:$0xff] }
  0x7d   : > { %686 = vmatpush.msra.mxu2 %v307_v13  ;;  %332 = vmatpush.msra.mxu0 %v307_v13 }
  0x7f   : > { %687 = vmatpush.msra.mxu2 %v306_v14  ;;  %333 = vmatpush.msra.mxu0 %v306_v14 }
  0x81   : > { %688 = vmatpush.msra.mxu2 %v305_v15  ;;  %334 = vmatpush.msra.mxu0 %v305_v15 }
  0x83   : > { %689 = vmatpush.msra.mxu2 %v304_v16  ;;  %335 = vmatpush.msra.mxu0 %v304_v16  ;;  %v395_v16 = vld [vmem:[%s1331_s30 + $0x50] sm:$0xff] }
  0x84   : > { %360 = vmatmul.f32.vlgmr.msra.gmra.mxu2 %v296_v17  ;;  %336 = vmatmul.f32.vlgmr.msra.gmra.mxu0 %v288_v18  ;;  %v388_v18 = vld [vmem:[%s1331_s30 + $0x18] sm:$0xff] }
  0x8c   : > { %363 = vmatmul.f32.gmra.mxu2 %v297_v19  ;;  %339 = vmatmul.f32.gmra.mxu0 %v289_v20 }
  0x94   : > { %366 = vmatmul.f32.gmra.mxu2 %v298_v21  ;;  %342 = vmatmul.f32.gmra.mxu0 %v290_v22  ;;  %v396_v22 = vld [vmem:[%s1331_s30 + $0x58] sm:$0xff] }
  0x9c   : > { %369 = vmatmul.f32.gmra.mxu2 %v299_v23  ;;  %345 = vmatmul.f32.gmra.mxu0 %v291_v24  ;;  %v389_v24 = vld [vmem:[%s1331_s30 + $0x20] sm:$0xff] }
  0xa4   : > { %372 = vmatmul.f32.gmra.mxu2 %v300_v25  ;;  %348 = vmatmul.f32.gmra.mxu0 %v292_v26 }
  0xac   : > { %375 = vmatmul.f32.gmra.mxu2 %v301_v27  ;;  %351 = vmatmul.f32.gmra.mxu0 %v293_v28  ;;  %v397_v28 = vld [vmem:[%s1331_s30 + $0x60] sm:$0xff] }
  0xb4   : > { %378 = vmatmul.f32.gmra.mxu2 %v302_v29  ;;  %354 = vmatmul.f32.gmra.mxu0 %v294_v30  ;;  %v390_v30 = vld [vmem:[%s1331_s30 + $0x28] sm:$0xff] }
  0xbc   : > { %381 = vmatmul.f32.gmra.mxu2 %v303_v31  ;;  %357 = vmatmul.f32.gmra.mxu0 %v295_v32 }
 0x101   : > { %v337_v34 = vpop.f32.mrf.mxu0 }
 0x107   : > { %v361_v33 = vpop.f32.mrf.mxu2 }
 0x109   : > { %v340_v36 = vpop.f32.mrf.mxu0 }
 0x10f   : > { %v364_v35 = vpop.f32.mrf.mxu2 }
 0x111   : > { %v343_v38 = vpop.f32.mrf.mxu0 }
 0x117   : > { %v367_v37 = vpop.f32.mrf.mxu2 }
 0x119   : > { %v346_v40 = vpop.f32.mrf.mxu0 }
 0x11f   : > { %v370_v39 = vpop.f32.mrf.mxu2 }
 0x121   : > { %v349_v43 = vpop.f32.mrf.mxu0 }
 0x127   : > { %v373_v41 = vpop.f32.mrf.mxu2 }
 0x129   : > { %v352_v45 = vpop.f32.mrf.mxu0 }
 0x12f   : > { %v376_v42 = vpop.f32.mrf.mxu2 }
 0x131   : > { %v355_v47 = vpop.f32.mrf.mxu0 }
 0x137   : > { %v379_v44 = vpop.f32.mrf.mxu2 }
 0x139   : > { %v358_v48 = vpop.f32.mrf.mxu0 }
 0x13f   : > { %v382_v46 = vpop.f32.mrf.mxu2 }
 0x140   : > { %417 = vmatpush.msra.mxu1 %v382_v46  ;;  %690 = vmatpush.msra.mxu3 %v382_v46  ;;  %v400_v46 = vld [vmem:[%s1331_s30 + $0x78] sm:$0xff] }
 0x142   : > { %418 = vmatpush.msra.mxu1 %v379_v44  ;;  %691 = vmatpush.msra.mxu3 %v379_v44 }
 0x144   : > { %419 = vmatpush.msra.mxu1 %v376_v42  ;;  %692 = vmatpush.msra.mxu3 %v376_v42  ;;  %v392_v42 = vld [vmem:[%s1331_s30 + $0x38] sm:$0xff] }
 0x146   : > { %420 = vmatpush.msra.mxu1 %v373_v41  ;;  %693 = vmatpush.msra.mxu3 %v373_v41 }
 0x148   : > { %421 = vmatpush.msra.mxu1 %v370_v39  ;;  %694 = vmatpush.msra.mxu3 %v370_v39 }
 0x14a   : > { %422 = vmatpush.msra.mxu1 %v367_v37  ;;  %695 = vmatpush.msra.mxu3 %v367_v37 }
 0x14c   : > { %423 = vmatpush.msra.mxu1 %v364_v35  ;;  %696 = vmatpush.msra.mxu3 %v364_v35 }
 0x14e   : > { %424 = vmatpush.msra.mxu1 %v361_v33  ;;  %697 = vmatpush.msra.mxu3 %v361_v33 }
 0x150   : > { %425 = vmatpush.msra.mxu1 %v358_v48  ;;  %698 = vmatpush.msra.mxu3 %v358_v48 }
 0x152   : > { %426 = vmatpush.msra.mxu1 %v355_v47  ;;  %699 = vmatpush.msra.mxu3 %v355_v47 }
 0x154   : > { %427 = vmatpush.msra.mxu1 %v352_v45  ;;  %700 = vmatpush.msra.mxu3 %v352_v45 }
 0x156   : > { %428 = vmatpush.msra.mxu1 %v349_v43  ;;  %701 = vmatpush.msra.mxu3 %v349_v43 }
 0x158   : > { %429 = vmatpush.msra.mxu1 %v346_v40  ;;  %702 = vmatpush.msra.mxu3 %v346_v40  ;;  %v399_v40 = vld [vmem:[%s1331_s30 + $0x70] sm:$0xff] }
 0x15a   : > { %430 = vmatpush.msra.mxu1 %v343_v38  ;;  %703 = vmatpush.msra.mxu3 %v343_v38 }
 0x15c   : > { %431 = vmatpush.msra.mxu1 %v340_v36  ;;  %704 = vmatpush.msra.mxu3 %v340_v36  ;;  %v391_v36 = vld [vmem:[%s1331_s30 + $0x30] sm:$0xff] }
 0x15e   : > { %432 = vmatpush.msra.mxu1 %v337_v34  ;;  %705 = vmatpush.msra.mxu3 %v337_v34  ;;  %v398_v34 = vld [vmem:[%s1331_s30 + $0x68] sm:$0xff] }
 0x15f   : > { %457 = vmatmul.f32.vlgmr.msra.gmra.mxu3 %v409_v49  ;;  %433 = vmatmul.f32.vlgmr.msra.gmra.mxu1 %v401_v50 }
 0x167   : > { %460 = vmatmul.f32.gmra.mxu3 %v410_v51  ;;  %436 = vmatmul.f32.gmra.mxu1 %v402_v52 }
 0x16f   : > { %463 = vmatmul.f32.gmra.mxu3 %v411_v53  ;;  %439 = vmatmul.f32.gmra.mxu1 %v403_v54 }
 0x177   : > { %466 = vmatmul.f32.gmra.mxu3 %v412_v55  ;;  %442 = vmatmul.f32.gmra.mxu1 %v404_v56 }
 0x17f   : > { %469 = vmatmul.f32.gmra.mxu3 %v413_v57  ;;  %445 = vmatmul.f32.gmra.mxu1 %v405_v58 }
 0x187   : > { %472 = vmatmul.f32.gmra.mxu3 %v414_v59  ;;  %448 = vmatmul.f32.gmra.mxu1 %v406_v60 }
 0x18f   : > { %475 = vmatmul.f32.gmra.mxu3 %v415_v61  ;;  %451 = vmatmul.f32.gmra.mxu1 %v407_v62 }
 0x197   : > { %478 = vmatmul.f32.gmra.mxu3 %v416_v63  ;;  %454 = vmatmul.f32.gmra.mxu1 %v408_v0 }
 0x1dc   : > { %v434_v2 = vpop.f32.mrf.mxu1 }
 0x1dd   : > { %v482_v3 = vadd.f32 %v434_v2, %v385_v1 }
 0x1df   : > { %498 = vst [vmem:[%s1331_s30] sm:$0xff] %v482_v3 }
 0x1e2   : > { %v458_v5 = vpop.f32.mrf.mxu3 }
 0x1e3   : > { %v490_v7 = vadd.f32 %v458_v5, %v393_v4 }
 0x1e4   : > { %v437_v8 = vpop.f32.mrf.mxu1 }
 0x1e5   : > { %506 = vst [vmem:[%s1331_s30 + $0x40] sm:$0xff] %v490_v7  ;;  %v483_v9 = vadd.f32 %v437_v8, %v386_v6 }
 0x1e7   : > { %499 = vst [vmem:[%s1331_s30 + $0x8] sm:$0xff] %v483_v9 }
 0x1ea   : > { %v461_v11 = vpop.f32.mrf.mxu3 }
 0x1eb   : > { %v491_v13 = vadd.f32 %v461_v11, %v394_v10 }
 0x1ec   : > { %v440_v14 = vpop.f32.mrf.mxu1 }
 0x1ed   : > { %507 = vst [vmem:[%s1331_s30 + $0x48] sm:$0xff] %v491_v13  ;;  %v484_v15 = vadd.f32 %v440_v14, %v387_v12 }
 0x1ef   : > { %500 = vst [vmem:[%s1331_s30 + $0x10] sm:$0xff] %v484_v15 }
 0x1f2   : > { %v464_v17 = vpop.f32.mrf.mxu3 }
 0x1f3   : > { %v492_v19 = vadd.f32 %v464_v17, %v395_v16 }
 0x1f4   : > { %v443_v20 = vpop.f32.mrf.mxu1 }
 0x1f5   : > { %508 = vst [vmem:[%s1331_s30 + $0x50] sm:$0xff] %v492_v19  ;;  %v485_v21 = vadd.f32 %v443_v20, %v388_v18 }
 0x1f7   : > { %501 = vst [vmem:[%s1331_s30 + $0x18] sm:$0xff] %v485_v21 }
 0x1fa   : > { %v467_v23 = vpop.f32.mrf.mxu3 }
 0x1fb   : > { %v493_v25 = vadd.f32 %v467_v23, %v396_v22 }
 0x1fc   : > { %v446_v26 = vpop.f32.mrf.mxu1 }
 0x1fd   : > { %509 = vst [vmem:[%s1331_s30 + $0x58] sm:$0xff] %v493_v25  ;;  %v486_v27 = vadd.f32 %v446_v26, %v389_v24 }
 0x1ff   : > { %502 = vst [vmem:[%s1331_s30 + $0x20] sm:$0xff] %v486_v27 }
 0x202   : > { %v470_v29 = vpop.f32.mrf.mxu3 }
 0x203   : > { %v494_v31 = vadd.f32 %v470_v29, %v397_v28 }
 0x204   : > { %v449_v32 = vpop.f32.mrf.mxu1 }
 0x205   : > { %510 = vst [vmem:[%s1331_s30 + $0x60] sm:$0xff] %v494_v31  ;;  %v487_v33 = vadd.f32 %v449_v32, %v390_v30 }
 0x207   : > { %503 = vst [vmem:[%s1331_s30 + $0x28] sm:$0xff] %v487_v33 }
 0x20a   : > { %v473_v35 = vpop.f32.mrf.mxu3 }
 0x20b   : > { %v495_v37 = vadd.f32 %v473_v35, %v398_v34 }
 0x20c   : > { %v452_v38 = vpop.f32.mrf.mxu1 }
 0x20d   : > { %511 = vst [vmem:[%s1331_s30 + $0x68] sm:$0xff] %v495_v37  ;;  %v488_v39 = vadd.f32 %v452_v38, %v391_v36 }
 0x20f   : > { %504 = vst [vmem:[%s1331_s30 + $0x30] sm:$0xff] %v488_v39 }
 0x212   : > { %v476_v41 = vpop.f32.mrf.mxu3 }
 0x213   : > { %v496_v43 = vadd.f32 %v476_v41, %v399_v40 }
 0x214   : > { %v455_v44 = vpop.f32.mrf.mxu1 }
 0x215   : > { %512 = vst [vmem:[%s1331_s30 + $0x70] sm:$0xff] %v496_v43  ;;  %v489_v45 = vadd.f32 %v455_v44, %v392_v42 }
 0x217   : > { %505 = vst [vmem:[%s1331_s30 + $0x38] sm:$0xff] %v489_v45 }
 0x21a   : > { %v479_v47 = vpop.f32.mrf.mxu3 }
 0x21b   : > { %v497_v48 = vadd.f32 %v479_v47, %v400_v46 }
 0x21d   : > { %513 = vst [vmem:[%s1331_s30 + $0x78] sm:$0xff] %v497_v48 }
 0x21e   : > { %971 = shalt.err (!%p968_p3)
}
 0x21f   : > { %s1105_s14 = smov 128   ;;  %s1106_s20 = smov 8  }
 0x220   : > { %714 = dma.vmem_to_hbm [thread:$0]  (%p1217_p8), %s528_s15, 2048, %s530_s2, %s515_s10, %s1105_s14, %s1105_s14, %s1106_s20  }
 0x221 PF: > { %s1528_s5 = sld [smem:[#allocation13_spill]]  ;;  %p734_p5 = scmp.ge.s32.totalorder %s1098_s25, 2 }
 0x223   : > { %p728_p10 = pnand %p734_p5, %p1223_p12 }
 0x225   : > { %p729_p2 = pneg %p728_p10 }
 0x227   : > { %s544_s11 = sand.u32 1, %s1528_s5  }
 0x228   : > { %s545_s30 = scalar_lea.sflag [#allocation4], %s544_s11 }
 0x229   : > { %1041 = dma.done.wait (%p729_p2), %s545_s30, 2048  }
 0x22a   : > { %1043 = vsyncadd (%p729_p2), %s545_s30, 4294965248  ;;  %s22_s25 = sadd.s32 1, %s1098_s25   ;;  %s1531_s26 = sld [smem:[#allocation14_spill]] }
 0x22b   : > { %p1436_p9 = scmp.ge.s32.totalorder %s22_s25, 6   ;;  %s1532_s14 = sld [smem:[#allocation22_spill]] }
 0x22c   : > { %s1533_s29 = sld [smem:[#allocation15_spill]]  ;;  %s1539_s12 = smov %s1050_s13 }
 0x22d   : > { %s1534_s20 = sld [smem:[#allocation23_spill]]  ;;  %s1541_s15 = smov %s1062_s16 }
 0x22e   : > { %s1535_s24 = sld [smem:[#allocation17_spill]]  ;;  %s1542_s16 = smov %s1066_s17 }
 0x22f   : > { %s1536_s8 = sld [smem:[#allocation20_spill]]  ;;  %s1543_s17 = smov %s1293_s22 }
 0x230   : > { %s1537_s2 = sld [smem:[#allocation21_spill]]  ;;  %s1540_s13 = smov %s1531_s26 }
 0x231   : > { %s1544_s18 = smov %s1074_s19  ;;  %s1546_s21 = smov %s1090_s23 }
 0x232   : > { %s1545_s19 = smov %s1533_s29  ;;  %21 = sbr.rel (!%p1436_p9) target bundleno = 16 (0x10), region = 98 }
 0x234   : > { %s1547_s22 = smov %s1535_s24 }
 0x235   : > { %s1548_s23 = smov %s1536_s8 }
 0x236   : > { %s1549_s24 = smov %s1537_s2 }
 0x237   :  { %551 = vsyncpa [#allocation3], 1 }
 0x238   :  { %553 = vsyncpa [#allocation3 + $0x1], 1 }
 0x239   :  { %554 = vsyncpa [#allocation6], 1 }
 0x23a   :  { %556 = vsyncpa [#allocation6 + $0x1], 1 }
 0x23b   :  { %557 = vsyncpa [#allocation4], 1 }
 0x23c   :  { %559 = vsyncpa [#allocation4 + $0x1], 1 }

</bundles_post_ra>
